<compile_context>
chip_gen: v6e
topology: v6e:2x2x1
jax: 0.10.0
libtpu: 0.0.40
codegen_flags: <defaults>
</compile_context>

<pallas_src>
import functools

import jax
import jax.numpy as jnp
from jax.experimental import pallas as pl
from jax.experimental.pallas import tpu as pltpu

# Deterministic stand-in for `(random.random() > 0.5) * 2 - 1` in the torch module.
SHIFT = 1

O_GROUPS = 2   # groups (the "o" axis)
C_IN = 64      # in channels per group (the "i" axis)
C_OUT = 16     # out channels per group (the "k" axis)
KW = 3         # conv taps along w (the "j" axis)
H = 14
W = 14
HW = H * W     # 196 lanes


def fused_conv_kernel(w_ref, x_ref, o_ref, *, shift):
    # w_ref : (48, 64)   rows = (tap j, out k), cols = in channel i
    # x_ref : (128, 196) rows = (group o, in ch i), lanes = h*14 + w  (RAW input)
    # o_ref : (32, 196)  rows = (group o, out k),   lanes = h*14 + w
    #
    # With the input w-roll and the output h-roll folded in, tap j needs
    #   out_j[h*W + n] = P_j[((h - shift) % H)*W + ((n + j - 1 - shift) % W)]
    #                    masked to 0 where n + j - 1 is outside [0, W-1],
    # where P_j is the per-tap channel contraction (the matmul below).  A flat
    # roll of the 196 lanes by s_tot = shift*W + (shift + 1 - j) realizes this
    # except on the lanes where the circular w-roll wraps (there the flat roll
    # borrows from the adjacent h-row); those lanes are fixed with a second roll
    # offset by +-W and a select.

    lane = jax.lax.broadcasted_iota(jnp.int32, (1, HW), 1)            # 0..195
    # w coordinate of every lane; exact (values << 2^24, wide margin before trunc).
    hrow = ((lane.astype(jnp.float32) + 0.5) * (1.0 / W)).astype(jnp.int32)
    wcol = lane - hrow * W                                            # (1, 196) int32

    w_all = w_ref[...]                                                # (48, 64)

    for g in range(O_GROUPS):
        xg = x_ref[g * C_IN:(g + 1) * C_IN, :]                        # (64, 196)
        # One MXU matmul per group covers all 3 taps x 16 out channels.
        yg = jnp.dot(w_all, xg, preferred_element_type=jnp.float32)   # (48, 196)

        acc = jnp.zeros((C_OUT, HW), jnp.float32)
        for j in range(KW):
            pj = yg[j * C_OUT:(j + 1) * C_OUT, :]                     # (16, 196)
            s_w = shift + 1 - j              # input w-roll + tap offset (static)
            s_tot = (shift * W + s_w) % HW   # + output h-roll, one flat lane roll
            cj = pltpu.roll(pj, shift=s_tot, axis=1)
            if s_w > 0:
                # Lanes n < s_w wrapped around the w axis: the flat roll pulled
                # from the wrong h-row; fix with a roll shorter by one h-row.
                corr = pltpu.roll(pj, shift=(s_tot - W) % HW, axis=1)
                cj = jnp.where(wcol < s_w, corr, cj)
            elif s_w < 0:
                corr = pltpu.roll(pj, shift=(s_tot + W) % HW, axis=1)
                cj = jnp.where(wcol >= W + s_w, corr, cj)
            # Conv zero padding: tap j reads (pre-roll) input w position n+j-1.
            if j == 0:
                cj = jnp.where(wcol >= 1, cj, 0.0)
            elif j == KW - 1:
                cj = jnp.where(wcol <= W - 2, cj, 0.0)
            acc = acc + cj

        o_ref[g * C_OUT:(g + 1) * C_OUT, :] = acc.astype(o_ref.dtype)


@functools.partial(jax.jit, static_argnames=("shift",))
def kernel_generated_2_forward(x, weight, shift=SHIFT):
    """x: (1, 128, 14, 14) f32 NCHW;  weight: (64, 16, 3) f32."""
    x_flat = x.reshape(O_GROUPS * C_IN, HW)                    # (128, 196), free view
    # (i, k, j) -> (j*k, i): the only remaining wrapper op on weight (12 KB).
    w48 = jnp.transpose(weight, (2, 1, 0)).reshape(KW * C_OUT, C_IN)   # (48, 64)

    out = pl.pallas_call(
        functools.partial(fused_conv_kernel, shift=shift),
        out_shape=jax.ShapeDtypeStruct((O_GROUPS * C_OUT, HW), x.dtype),
    )(w48, x_flat)

    return out.reshape(1, O_GROUPS * C_OUT, H, W)              # (1, 32, 14, 14), free view


def reference_forward(x, weight, shift=SHIFT):
    """Pure-JAX transcription of the torch module, for verification."""
    t = x.reshape(1, 2, 64, 14, 14)
    t = jnp.roll(t, shift, axis=4)
    tp = jnp.pad(t, ((0, 0), (0, 0), (0, 0), (0, 0), (1, 1)))
    # unfold(kernel=(3,1), padding=(1,0)) then reshape to (1, 2, 64, 14, 3, 14)
    t2 = jnp.stack([tp[..., j:j + 14] for j in range(3)], axis=4)
    t3 = jnp.einsum('moiljn,ikj->mokln', t2, weight, precision='highest')
    t4 = t3.reshape(1, 32, 14, 14)
    t4 = jnp.roll(t4, shift, axis=2)
    return t4


if __name__ == "__main__":
    key = jax.random.PRNGKey(0)
    kx, kw = jax.random.split(key)
    # Shapes implied by the module's forward: x must reshape to (1, 2, 64, 14, 14).
    x = jax.random.normal(kx, (1, O_GROUPS * C_IN, H, W), dtype=jnp.float32)
    weight = jax.random.normal(kw, (C_IN, C_OUT, KW), dtype=jnp.float32)

    # The torch module draws shift in {+1, -1} at init; validate both branches.
    for s in (1, -1):
        y = jax.block_until_ready(kernel_generated_2_forward(x, weight, shift=s))
        y_ref = reference_forward(x, weight, shift=s)
        assert y.shape == (1, O_GROUPS * C_OUT, H, W), y.shape
        abs_err = float(jnp.max(jnp.abs(y - y_ref)))
        rel_err = float(jnp.linalg.norm(y - y_ref) / jnp.linalg.norm(y_ref))
        # Structural/indexing bugs give errors O(10); MXU f32-pass rounding is far
        # below these thresholds (outputs have std ~14).
        if not (rel_err < 1e-2 and abs_err < 2e-1):
            raise AssertionError(
                f"shift={s}: mismatch vs reference (max abs {abs_err}, rel {rel_err})")

    print("KERNEL_OK")
</pallas_src>

<mosaic_0001>
module attributes {stable_mosaic.version = 11 : i64} {
  func.func @fused_conv_kernel(%arg0: memref<48x64xf32, #tpu.memory_space<vmem>>, %arg1: memref<128x196xf32, #tpu.memory_space<vmem>>, %arg2: memref<32x196xf32, #tpu.memory_space<vmem>>) attributes {dimension_semantics = [], scalar_prefetch = 0 : i64, scratch_operands = 0 : i64, tpu.core_type = #tpu.core_type<tc>} {
    %0 = tpu.iota {dimensions = array<i32: 1>} : vector<1x196xi32>
    %1 = arith.sitofp %0 : vector<1x196xi32> to vector<1x196xf32>
    %cst = arith.constant 5.000000e-01 : f32
    %2 = vector.broadcast %cst : f32 to vector<1x196xf32>
    %3 = arith.addf %1, %2 : vector<1x196xf32>
    %cst_0 = arith.constant 0.0714285746 : f32
    %4 = vector.broadcast %cst_0 : f32 to vector<1x196xf32>
    %5 = arith.mulf %3, %4 : vector<1x196xf32>
    %6 = arith.fptosi %5 : vector<1x196xf32> to vector<1x196xi32>
    %c14_i32 = arith.constant 14 : i32
    %7 = vector.broadcast %c14_i32 : i32 to vector<1x196xi32>
    %8 = arith.muli %6, %7 : vector<1x196xi32>
    %9 = arith.subi %0, %8 : vector<1x196xi32>
    %c0 = arith.constant 0 : index
    %c0_1 = arith.constant 0 : index
    %10 = vector.load %arg0[%c0, %c0_1] : memref<48x64xf32, #tpu.memory_space<vmem>>, vector<48x64xf32>
    %c0_2 = arith.constant 0 : index
    %c0_3 = arith.constant 0 : index
    %11 = vector.load %arg1[%c0_2, %c0_3] : memref<128x196xf32, #tpu.memory_space<vmem>>, vector<64x196xf32>
    %cst_4 = arith.constant dense<0.000000e+00> : vector<48x196xf32>
    %12 = tpu.matmul %10, %11, %cst_4 {dimension_numbers = #tpu.dot_dimension_numbers<[1], [0], [0], [1], [0, 0, 1, 1], [], []>} : vector<48x64xf32>, vector<64x196xf32>, vector<48x196xf32> -> vector<48x196xf32>
    %cst_5 = arith.constant 0.000000e+00 : f32
    %13 = vector.broadcast %cst_5 : f32 to vector<16x196xf32>
    %14 = vector.extract_strided_slice %12 {offsets = [0, 0], sizes = [16, 196], strides = [1, 1]} : vector<48x196xf32> to vector<16x196xf32>
    %c16_i32 = arith.constant 16 : i32
    %15 = tpu.dynamic_rotate %14 by %c16_i32 dim 1 : vector<16x196xf32>, i32 -> vector<16x196xf32>
    %c2_i32 = arith.constant 2 : i32
    %16 = tpu.dynamic_rotate %14 by %c2_i32 dim 1 : vector<16x196xf32>, i32 -> vector<16x196xf32>
    %c2_i32_6 = arith.constant 2 : i32
    %17 = vector.broadcast %c2_i32_6 : i32 to vector<1x196xi32>
    %18 = arith.cmpi slt, %9, %17 : vector<1x196xi32>
    %19 = vector.shape_cast %18 : vector<1x196xi1> to vector<1x196xi1>
    %20 = vector.broadcast %19 : vector<1x196xi1> to vector<16x196xi1>
    %21 = arith.select %20, %16, %15 : vector<16x196xi1>, vector<16x196xf32>
    %c1_i32 = arith.constant 1 : i32
    %22 = vector.broadcast %c1_i32 : i32 to vector<1x196xi32>
    %23 = arith.cmpi sge, %9, %22 : vector<1x196xi32>
    %cst_7 = arith.constant 0.000000e+00 : f32
    %24 = vector.shape_cast %23 : vector<1x196xi1> to vector<1x196xi1>
    %25 = vector.broadcast %24 : vector<1x196xi1> to vector<16x196xi1>
    %26 = vector.broadcast %cst_7 : f32 to vector<16x196xf32>
    %27 = arith.select %25, %21, %26 : vector<16x196xi1>, vector<16x196xf32>
    %28 = arith.addf %13, %27 : vector<16x196xf32>
    %29 = vector.extract_strided_slice %12 {offsets = [16, 0], sizes = [16, 196], strides = [1, 1]} : vector<48x196xf32> to vector<16x196xf32>
    %c15_i32 = arith.constant 15 : i32
    %30 = tpu.dynamic_rotate %29 by %c15_i32 dim 1 : vector<16x196xf32>, i32 -> vector<16x196xf32>
    %c1_i32_8 = arith.constant 1 : i32
    %31 = tpu.dynamic_rotate %29 by %c1_i32_8 dim 1 : vector<16x196xf32>, i32 -> vector<16x196xf32>
    %c1_i32_9 = arith.constant 1 : i32
    %32 = vector.broadcast %c1_i32_9 : i32 to vector<1x196xi32>
    %33 = arith.cmpi slt, %9, %32 : vector<1x196xi32>
    %34 = vector.shape_cast %33 : vector<1x196xi1> to vector<1x196xi1>
    %35 = vector.broadcast %34 : vector<1x196xi1> to vector<16x196xi1>
    %36 = arith.select %35, %31, %30 : vector<16x196xi1>, vector<16x196xf32>
    %37 = arith.addf %28, %36 : vector<16x196xf32>
    %38 = vector.extract_strided_slice %12 {offsets = [32, 0], sizes = [16, 196], strides = [1, 1]} : vector<48x196xf32> to vector<16x196xf32>
    %c14_i32_10 = arith.constant 14 : i32
    %39 = tpu.dynamic_rotate %38 by %c14_i32_10 dim 1 : vector<16x196xf32>, i32 -> vector<16x196xf32>
    %c12_i32 = arith.constant 12 : i32
    %40 = vector.broadcast %c12_i32 : i32 to vector<1x196xi32>
    %41 = arith.cmpi sle, %9, %40 : vector<1x196xi32>
    %cst_11 = arith.constant 0.000000e+00 : f32
    %42 = vector.shape_cast %41 : vector<1x196xi1> to vector<1x196xi1>
    %43 = vector.broadcast %42 : vector<1x196xi1> to vector<16x196xi1>
    %44 = vector.broadcast %cst_11 : f32 to vector<16x196xf32>
    %45 = arith.select %43, %39, %44 : vector<16x196xi1>, vector<16x196xf32>
    %46 = arith.addf %37, %45 : vector<16x196xf32>
    %c0_12 = arith.constant 0 : index
    %c0_13 = arith.constant 0 : index
    %47 = vector.load %arg2[%c0_12, %c0_13] : memref<32x196xf32, #tpu.memory_space<vmem>>, vector<16x196xf32>
    tpu.vector_store %arg2[%c0_12, %c0_13], %46 {strides = array<i32>} : memref<32x196xf32, #tpu.memory_space<vmem>>, vector<16x196xf32>,
    %c64 = arith.constant 64 : index
    %c0_14 = arith.constant 0 : index
    %48 = vector.load %arg1[%c64, %c0_14] : memref<128x196xf32, #tpu.memory_space<vmem>>, vector<64x196xf32>
    %cst_15 = arith.constant dense<0.000000e+00> : vector<48x196xf32>
    %49 = tpu.matmul %10, %48, %cst_15 {dimension_numbers = #tpu.dot_dimension_numbers<[1], [0], [0], [1], [0, 0, 1, 1], [], []>} : vector<48x64xf32>, vector<64x196xf32>, vector<48x196xf32> -> vector<48x196xf32>
    %cst_16 = arith.constant 0.000000e+00 : f32
    %50 = vector.broadcast %cst_16 : f32 to vector<16x196xf32>
    %51 = vector.extract_strided_slice %49 {offsets = [0, 0], sizes = [16, 196], strides = [1, 1]} : vector<48x196xf32> to vector<16x196xf32>
    %c16_i32_17 = arith.constant 16 : i32
    %52 = tpu.dynamic_rotate %51 by %c16_i32_17 dim 1 : vector<16x196xf32>, i32 -> vector<16x196xf32>
    %c2_i32_18 = arith.constant 2 : i32
    %53 = tpu.dynamic_rotate %51 by %c2_i32_18 dim 1 : vector<16x196xf32>, i32 -> vector<16x196xf32>
    %c2_i32_19 = arith.constant 2 : i32
    %54 = vector.broadcast %c2_i32_19 : i32 to vector<1x196xi32>
    %55 = arith.cmpi slt, %9, %54 : vector<1x196xi32>
    %56 = vector.shape_cast %55 : vector<1x196xi1> to vector<1x196xi1>
    %57 = vector.broadcast %56 : vector<1x196xi1> to vector<16x196xi1>
    %58 = arith.select %57, %53, %52 : vector<16x196xi1>, vector<16x196xf32>
    %c1_i32_20 = arith.constant 1 : i32
    %59 = vector.broadcast %c1_i32_20 : i32 to vector<1x196xi32>
    %60 = arith.cmpi sge, %9, %59 : vector<1x196xi32>
    %cst_21 = arith.constant 0.000000e+00 : f32
    %61 = vector.shape_cast %60 : vector<1x196xi1> to vector<1x196xi1>
    %62 = vector.broadcast %61 : vector<1x196xi1> to vector<16x196xi1>
    %63 = vector.broadcast %cst_21 : f32 to vector<16x196xf32>
    %64 = arith.select %62, %58, %63 : vector<16x196xi1>, vector<16x196xf32>
    %65 = arith.addf %50, %64 : vector<16x196xf32>
    %66 = vector.extract_strided_slice %49 {offsets = [16, 0], sizes = [16, 196], strides = [1, 1]} : vector<48x196xf32> to vector<16x196xf32>
    %c15_i32_22 = arith.constant 15 : i32
    %67 = tpu.dynamic_rotate %66 by %c15_i32_22 dim 1 : vector<16x196xf32>, i32 -> vector<16x196xf32>
    %c1_i32_23 = arith.constant 1 : i32
    %68 = tpu.dynamic_rotate %66 by %c1_i32_23 dim 1 : vector<16x196xf32>, i32 -> vector<16x196xf32>
    %c1_i32_24 = arith.constant 1 : i32
    %69 = vector.broadcast %c1_i32_24 : i32 to vector<1x196xi32>
    %70 = arith.cmpi slt, %9, %69 : vector<1x196xi32>
    %71 = vector.shape_cast %70 : vector<1x196xi1> to vector<1x196xi1>
    %72 = vector.broadcast %71 : vector<1x196xi1> to vector<16x196xi1>
    %73 = arith.select %72, %68, %67 : vector<16x196xi1>, vector<16x196xf32>
    %74 = arith.addf %65, %73 : vector<16x196xf32>
    %75 = vector.extract_strided_slice %49 {offsets = [32, 0], sizes = [16, 196], strides = [1, 1]} : vector<48x196xf32> to vector<16x196xf32>
    %c14_i32_25 = arith.constant 14 : i32
    %76 = tpu.dynamic_rotate %75 by %c14_i32_25 dim 1 : vector<16x196xf32>, i32 -> vector<16x196xf32>
    %c12_i32_26 = arith.constant 12 : i32
    %77 = vector.broadcast %c12_i32_26 : i32 to vector<1x196xi32>
    %78 = arith.cmpi sle, %9, %77 : vector<1x196xi32>
    %cst_27 = arith.constant 0.000000e+00 : f32
    %79 = vector.shape_cast %78 : vector<1x196xi1> to vector<1x196xi1>
    %80 = vector.broadcast %79 : vector<1x196xi1> to vector<16x196xi1>
    %81 = vector.broadcast %cst_27 : f32 to vector<16x196xf32>
    %82 = arith.select %80, %76, %81 : vector<16x196xi1>, vector<16x196xf32>
    %83 = arith.addf %74, %82 : vector<16x196xf32>
    %c16 = arith.constant 16 : index
    %c0_28 = arith.constant 0 : index
    %84 = vector.load %arg2[%c16, %c0_28] : memref<32x196xf32, #tpu.memory_space<vmem>>, vector<16x196xf32>
    tpu.vector_store %arg2[%c16, %c0_28], %83 {strides = array<i32>} : memref<32x196xf32, #tpu.memory_space<vmem>>, vector<16x196xf32>,
    return
  }
}

</mosaic_0001>

<bundles_post_ra>
// kernel: kernel_generated_2_forward.1
= control target key start
LH: loop header
LB: loop body
LE: loop exit
PB: predicated region body
PF: predicated region fallthrough
CT: control target
= control target key end

     0   :  { %v675_v3 = vmov 0.0   ;;  %vm48_vm0 = vcmask 523264   ;;  %s676_s28 = smov 68   ;;  %vm168_vm1 = vcmask 1048096   ;;  %s678_s29 = smov 76   ;;  %vm222_vm2 = vcmask 621568   ;;  %s1192_s1 = inlined_call_operand.vmem [shape: f32[128,196], index: 1, kind: input, shape index: {}]   ;;  %s1193_s0 = inlined_call_operand.vmem [shape: f32[48,64], index: 0, kind: input, shape index: {}]   ;;  %s1194_s2 = inlined_call_operand.vmem [shape: f32[32,196], index: 2, kind: output, shape index: {}]  }
   0x1   :  { %v47_v0 = vld [vmem:[%s1192_s1 + $0x78] sm:$0xff]  ;;  %v46_v2 = vld [vmem:[%s1192_s1 + $0x70] sm:$0xff]  ;;  %131 = vmatprep.mubr.f32.mxu0 %v675_v3  ;;  %445 = vmatprep.mubr.f32.mxu1 %v675_v3  ;;  %v45_v5 = vld [vmem:[%s1192_s1 + $0x68] sm:$0xff]  ;;  %s679_s30 = smov 61   ;;  %s680_s3 = smov 75   ;;  %vm205_vm3 = vcmask 506880  }
   0x2   :  { %v380_v1 = vld [vmem:[%s1192_s1 + $0xf8] sm:$0xff]  ;;  %83 = vmatprep.subr.mxu0 %v47_v0  ;;  %v379_v4 = vld [vmem:[%s1192_s1 + $0xf0] sm:$0xff]  ;;  %v378_v6 = vld [vmem:[%s1192_s1 + $0xe8] sm:$0xff]  ;;  %s681_s4 = smov 74   ;;  %vm300_vm6 = vcmask 613376   ;;  %vm283_vm9 = vcmask 498688  }
   0x3   :  { %397 = vmatprep.subr.mxu1 %v380_v1  ;;  %84 = vmatpush1.msra.mxu0 %v46_v2  ;;  %v44_v7 = vld [vmem:[%s1192_s1 + $0x60] sm:$0xff]  ;;  %v43_v9 = vld [vmem:[%s1192_s1 + $0x58] sm:$0xff]  ;;  %v42_v11 = vld [vmem:[%s1192_s1 + $0x50] sm:$0xff]  ;;  %vm345_vm14 = vcmask 605184   ;;  %vm361_vm15 = vcmask 556032  }
   0x4   :  { %398 = vmatpush1.msra.mxu1 %v379_v4  ;;  %v377_v8 = vld [vmem:[%s1192_s1 + $0xe0] sm:$0xff]  ;;  %85 = vmatprep.subr.mxu0 %v45_v5  ;;  %v376_v10 = vld [vmem:[%s1192_s1 + $0xd8] sm:$0xff]  ;;  %v375_v12 = vld [vmem:[%s1192_s1 + $0xd0] sm:$0xff] }
   0x5   :  { %399 = vmatprep.subr.mxu1 %v378_v6  ;;  %86 = vmatpush1.msra.mxu0 %v44_v7  ;;  %v41_v13 = vld [vmem:[%s1192_s1 + $0x48] sm:$0xff]  ;;  %v40_v15 = vld [vmem:[%s1192_s1 + $0x40] sm:$0xff]  ;;  %v39_v17 = vld [vmem:[%s1192_s1 + $0x38] sm:$0xff] }
   0x6   :  { %400 = vmatpush1.msra.mxu1 %v377_v8  ;;  %v374_v14 = vld [vmem:[%s1192_s1 + $0xc8] sm:$0xff]  ;;  %87 = vmatprep.subr.mxu0 %v43_v9  ;;  %v373_v16 = vld [vmem:[%s1192_s1 + $0xc0] sm:$0xff]  ;;  %v372_v18 = vld [vmem:[%s1192_s1 + $0xb8] sm:$0xff] }
   0x7   :  { %401 = vmatprep.subr.mxu1 %v376_v10  ;;  %88 = vmatpush1.msra.mxu0 %v42_v11  ;;  %v38_v19 = vld [vmem:[%s1192_s1 + $0x30] sm:$0xff]  ;;  %v37_v21 = vld [vmem:[%s1192_s1 + $0x28] sm:$0xff]  ;;  %v36_v23 = vld [vmem:[%s1192_s1 + $0x20] sm:$0xff] }
   0x8   :  { %402 = vmatpush1.msra.mxu1 %v375_v12  ;;  %89 = vmatprep.subr.mxu0 %v41_v13  ;;  %v371_v20 = vld [vmem:[%s1192_s1 + $0xb0] sm:$0xff]  ;;  %v370_v22 = vld [vmem:[%s1192_s1 + $0xa8] sm:$0xff]  ;;  %v369_v24 = vld [vmem:[%s1192_s1 + $0xa0] sm:$0xff] }
   0x9   :  { %403 = vmatprep.subr.mxu1 %v374_v14  ;;  %90 = vmatpush1.msra.mxu0 %v40_v15  ;;  %v35_v25 = vld [vmem:[%s1192_s1 + $0x18] sm:$0xff]  ;;  %v34_v27 = vld [vmem:[%s1192_s1 + $0x10] sm:$0xff]  ;;  %v33_v29 = vld [vmem:[%s1192_s1 + $0x8] sm:$0xff] }
   0xa   :  { %404 = vmatpush1.msra.mxu1 %v373_v16  ;;  %91 = vmatprep.subr.mxu0 %v39_v17  ;;  %v368_v26 = vld [vmem:[%s1192_s1 + $0x98] sm:$0xff]  ;;  %v367_v28 = vld [vmem:[%s1192_s1 + $0x90] sm:$0xff]  ;;  %v366_v30 = vld [vmem:[%s1192_s1 + $0x88] sm:$0xff] }
   0xb   :  { %405 = vmatprep.subr.mxu1 %v372_v18  ;;  %92 = vmatpush1.msra.mxu0 %v38_v19  ;;  %v32_v31 = vld [vmem:[%s1192_s1] sm:$0xff]  ;;  %v27_v34 = vld [vmem:[%s1193_s0 + $0x8] sm:$0xff]  ;;  %v28_v35 = vld [vmem:[%s1193_s0 + $0x10] sm:$0xff] }
   0xc   :  { %406 = vmatpush1.msra.mxu1 %v371_v20  ;;  %93 = vmatprep.subr.mxu0 %v37_v21  ;;  %v365_v32 = vld [vmem:[%s1192_s1 + $0x80] sm:$0xff]  ;;  %v29_v36 = vld [vmem:[%s1193_s0 + $0x18] sm:$0xff]  ;;  %v31_v38 = vld [vmem:[%s1193_s0 + $0x28] sm:$0xff] }
   0xd   :  { %407 = vmatprep.subr.mxu1 %v370_v22  ;;  %94 = vmatpush1.msra.mxu0 %v36_v23  ;;  %v26_v33 = vld [vmem:[%s1193_s0] sm:$0xff] }
   0xe   :  { %408 = vmatpush1.msra.mxu1 %v369_v24  ;;  %95 = vmatprep.subr.mxu0 %v35_v25  ;;  %v30_v37 = vld [vmem:[%s1193_s0 + $0x20] sm:$0xff]  ;;  %s677_s0 = smov 62  }
   0xf   :  { %409 = vmatprep.subr.mxu1 %v368_v26  ;;  %96 = vmatpush1.msra.mxu0 %v34_v27 }
  0x10   :  { %410 = vmatpush1.msra.mxu1 %v367_v28  ;;  %97 = vmatprep.subr.mxu0 %v33_v29 }
  0x11   :  { %411 = vmatprep.subr.mxu1 %v366_v30  ;;  %98 = vmatpush1.msra.mxu0 %v32_v31 }
  0x12   :  { %412 = vmatpush1.msra.mxu1 %v365_v32  ;;  %652 = vmatmul.mubr.msk.f32.vlgmr.msra.gmra.mxu0 %vm48_vm0, %v26_v33 }
  0x13   :  { %658 = vmatmul.mubr.msk.f32.vlgmr.msra.gmra.mxu1 %vm48_vm0, %v26_v33  ;;  %137 = vmatprep.mubr.f32.mxu0 %v675_v3 }
  0x14   :  { %451 = vmatprep.mubr.f32.mxu1 %v675_v3 }
  0x16   :  { %653 = vmatmul.mubr.msk.f32.gmra.mxu0 %vm48_vm0, %v27_v34 }
  0x17   :  { %659 = vmatmul.mubr.msk.f32.gmra.mxu1 %vm48_vm0, %v27_v34  ;;  %143 = vmatprep.mubr.f32.mxu0 %v675_v3 }
  0x18   :  { %457 = vmatprep.mubr.f32.mxu1 %v675_v3 }
  0x1a   :  { %654 = vmatmul.mubr.msk.f32.gmra.mxu0 %vm48_vm0, %v28_v35 }
  0x1b   :  { %660 = vmatmul.mubr.msk.f32.gmra.mxu1 %vm48_vm0, %v28_v35  ;;  %149 = vmatprep.mubr.f32.mxu0 %v675_v3 }
  0x1c   :  { %463 = vmatprep.mubr.f32.mxu1 %v675_v3 }
  0x1e   :  { %655 = vmatmul.mubr.msk.f32.gmra.mxu0 %vm48_vm0, %v29_v36 }
  0x1f   :  { %661 = vmatmul.mubr.msk.f32.gmra.mxu1 %vm48_vm0, %v29_v36  ;;  %155 = vmatprep.mubr.f32.mxu0 %v675_v3 }
  0x20   :  { %469 = vmatprep.mubr.f32.mxu1 %v675_v3 }
  0x22   :  { %656 = vmatmul.mubr.msk.f32.gmra.mxu0 %vm48_vm0, %v30_v37 }
  0x23   :  { %662 = vmatmul.mubr.msk.f32.gmra.mxu1 %vm48_vm0, %v30_v37  ;;  %161 = vmatprep.mubr.f32.mxu0 %v675_v3 }
  0x24   :  { %475 = vmatprep.mubr.f32.mxu1 %v675_v3 }
  0x26   :  { %657 = vmatmul.mubr.msk.f32.gmra.mxu0 %vm48_vm0, %v31_v38 }
  0x27   :  { %663 = vmatmul.mubr.msk.f32.gmra.mxu1 %vm48_vm0, %v31_v38 }
  0xd2   :  { %v133_v39 = vpop.f32.mrf.mxu0 }
  0xd3   :  { %v447_v40 = vpop.f32.mrf.mxu1  ;;  %169 = vrot.lane.b32.xlu0 %v133_v39, %s676_s28 }
  0xd4   :  { %482 = vrot.lane.b32.xlu1 %v447_v40, %s676_s28  ;;  %v135_v41 = vpop.f32.mrf.mxu0 }
  0xd5   :  { %v449_v42 = vpop.f32.mrf.mxu1 }
  0xd6   :  { %v139_v43 = vpop.f32.mrf.mxu0 }
  0xd7   :  { %v453_v44 = vpop.f32.mrf.mxu1  ;;  %172 = vrot.lane.b32.xlu0 %v139_v43, %s676_s28 }
  0xd8   :  { %485 = vrot.lane.b32.xlu1 %v453_v44, %s676_s28  ;;  %v141_v45 = vpop.f32.mrf.mxu0 }
  0xd9   :  { %v455_v46 = vpop.f32.mrf.mxu1 }
  0xda   :  { %v145_v47 = vpop.f32.mrf.mxu0 }
  0xdb   :  { %v459_v48 = vpop.f32.mrf.mxu1  ;;  %247 = vrot.lane.b32.xlu0 %v145_v47, %s676_s28 }
  0xdc   :  { %v147_v49 = vpop.f32.mrf.mxu0 }
  0xdd   :  { %v461_v50 = vpop.f32.mrf.mxu1 }
  0xde   :  { %v151_v51 = vpop.f32.mrf.mxu0 }
  0xdf   :  { %v465_v52 = vpop.f32.mrf.mxu1  ;;  %546 = vrot.lane.b32.xlu0 %v459_v48, %s676_s28  ;;  %250 = vrot.lane.b32.xlu1 %v151_v51, %s676_s28 }
  0xe0   :  { %v153_v53 = vpop.f32.mrf.mxu0 }
  0xe1   :  { %v467_v54 = vpop.f32.mrf.mxu1 }
  0xe2   :  { %v157_v55 = vpop.f32.mrf.mxu0 }
  0xe3   :  { %v471_v56 = vpop.f32.mrf.mxu1  ;;  %549 = vrot.lane.b32.xlu1 %v465_v52, %s676_s28  ;;  %315 = vrot.lane.b32.xlu0 %v157_v55, %s676_s28 }
  0xe4   :  { %v159_v57 = vpop.f32.mrf.mxu0 }
  0xe5   :  { %v473_v58 = vpop.f32.mrf.mxu1 }
  0xe6   :  { %v163_v59 = vpop.f32.mrf.mxu0 }
  0xe7   :  { %606 = vrot.lane.b32.xlu0 %v471_v56, %s676_s28  ;;  %318 = vrot.lane.b32.xlu1 %v163_v59, %s676_s28  ;;  %v477_v60 = vpop.f32.mrf.mxu1 }
  0xe8   :  { %v165_v13 = vpop.f32.mrf.mxu0 }
  0xe9   :  { %v479_v17 = vpop.f32.mrf.mxu1 }
  0xeb   :  { %609 = vrot.lane.b32.xlu1 %v477_v60, %s676_s28 }
 0x145   :  { %v849_v62 = vpop.permute.xlu0 %169 }
 0x146   :  { %v847_v61 = vpop.permute.xlu1 %482  ;;  %v171_v63 = vsel %vm168_vm1, %v849_v62, %v135_v41 }
 0x147   :  { %175 = vrot.lane.b32.xlu0 %v171_v63, %s676_s28  ;;  %v484_v1 = vsel %vm168_vm1, %v847_v61, %v449_v42 }
 0x149   :  { %v854_v0 = vpop.permute.xlu0 %172 }
 0x14a   :  { %v174_v2 = vsel %vm168_vm1, %v854_v0, %v141_v45  ;;  %v860_v3 = vpop.permute.xlu1 %485 }
 0x14b   :  { %488 = vrot.lane.b32.xlu0 %v484_v1, %s676_s28  ;;  %177 = vrot.lane.b32.xlu1 %v174_v2, %s676_s28  ;;  %v487_v4 = vsel %vm168_vm1, %v860_v3, %v455_v46 }
 0x14d   :  { %v884_v9 = vpop.permute.xlu0 %247 }
 0x14e   :  { %v249_v11 = vsel %vm168_vm1, %v884_v9, %v147_v49 }
 0x14f   :  { %193 = vrot.lane.b32.xlu0 %v171_v63, %s677_s0  ;;  %490 = vrot.lane.b32.xlu1 %v487_v4, %s676_s28 }
 0x151   :  { %v870_v5 = vpop.permute.xlu1 %250  ;;  %v892_v12 = vpop.permute.xlu0 %546 }
 0x152   :  { %v252_v6 = vsel %vm168_vm1, %v870_v5, %v153_v53  ;;  %v548_v14 = vsel %vm168_vm1, %v892_v12, %v461_v50 }
 0x153   :  { %214 = vrot.lane.b32.xlu0 %v171_v63, %s678_s29  ;;  %199 = vrot.lane.b32.xlu1 %v174_v2, %s677_s0 }
 0x155   :  { %v876_v7 = vpop.permute.xlu1 %549  ;;  %v912_v19 = vpop.permute.xlu0 %315 }
 0x156   :  { %v551_v8 = vsel %vm168_vm1, %v876_v7, %v467_v54  ;;  %v317_v20 = vsel %vm168_vm1, %v912_v19, %v159_v57 }
 0x157   :  { %500 = vrot.lane.b32.xlu0 %v484_v1, %s677_s0  ;;  %506 = vrot.lane.b32.xlu1 %v487_v4, %s677_s0 }
 0x159   :  { %v888_v10 = vpop.permute.xlu1 %318  ;;  %v917_v21 = vpop.permute.xlu0 %606 }
 0x15a   :  { %v320_v15 = vsel %vm168_vm1, %v888_v10, %v165_v13  ;;  %v608_v22 = vsel %vm168_vm1, %v917_v21, %v473_v58 }
 0x15b   :  { %520 = vrot.lane.b32.xlu0 %v484_v1, %s678_s29  ;;  %255 = vrot.lane.b32.xlu1 %v252_v6, %s676_s28 }
 0x15d   :  { %v900_v16 = vpop.permute.xlu1 %609 }
 0x15e   :  { %v906_v18 = vsel %vm168_vm1, %v900_v16, %v479_v17 }
 0x15f   :  { %218 = vrot.lane.b32.xlu0 %v174_v2, %s678_s29  ;;  %554 = vrot.lane.b32.xlu1 %v551_v8, %s676_s28 }
 0x163   :  { %524 = vrot.lane.b32.xlu0 %v487_v4, %s678_s29  ;;  %277 = vrot.lane.b32.xlu1 %v252_v6, %s679_s30  ;;  %v11_v4 = vlaneseq }
 0x167   :  { %253 = vrot.lane.b32.xlu0 %v249_v11, %s676_s28  ;;  %570 = vrot.lane.b32.xlu1 %v551_v8, %s679_s30 }
 0x16b   :  { %552 = vrot.lane.b32.xlu0 %v548_v14, %s676_s28  ;;  %323 = vrot.lane.b32.xlu1 %v320_v15, %s676_s28 }
 0x16f   :  { %271 = vrot.lane.b32.xlu0 %v249_v11, %s679_s30  ;;  %614 = vrot.lane.b32.xlu1 %v906_v18, %s676_s28 }
 0x173   :  { %292 = vrot.lane.b32.xlu0 %v249_v11, %s680_s3 }
 0x177   :  { %296 = vrot.lane.b32.xlu0 %v252_v6, %s680_s3 }
 0x17b   :  { %321 = vrot.lane.b32.xlu0 %v317_v20, %s676_s28 }
 0x17f   :  { %612 = vrot.lane.b32.xlu0 %v608_v22, %s676_s28 }
 0x183   :  { %564 = vrot.lane.b32.xlu0 %v548_v14, %s679_s30 }
 0x187   :  { %584 = vrot.lane.b32.xlu0 %v548_v14, %s680_s3 }
 0x18b   :  { %588 = vrot.lane.b32.xlu0 %v551_v8, %s680_s3 }
 0x18f   :  { %337 = vrot.lane.b32.xlu0 %v317_v20, %s681_s4 }
 0x193   :  { %622 = vrot.lane.b32.xlu0 %v608_v22, %s681_s4 }
 0x197   :  { %341 = vrot.lane.b32.xlu0 %v320_v15, %s681_s4 }
 0x1b9   :  { %v176_v23 = vpop.permute.xlu0 %175 }
 0x1ba   :  { %197 = vrot.lane.b32.xlu0 %v176_v23, %s677_s0  ;;  %v179_v24 = vsel %vm168_vm1, %v176_v23, %v849_v62 }
 0x1bb   :  { %195 = vrot.lane.b32.xlu1 %v179_v24, %s677_s0 }
 0x1bd   :  { %v489_v25 = vpop.permute.xlu0 %488  ;;  %v178_v26 = vpop.permute.xlu1 %177 }
 0x1be   :  { %504 = vrot.lane.b32.xlu0 %v489_v25, %s677_s0  ;;  %v180_v28 = vsel %vm168_vm1, %v178_v26, %v854_v0  ;;  %v492_v30 = vsel %vm168_vm1, %v489_v25, %v847_v61 }
 0x1bf   :  { %216 = vrot.lane.b32.xlu1 %v179_v24, %s678_s29 }
 0x1c1   :  { %v935_v27 = vpop.permute.xlu0 %193  ;;  %v491_v29 = vpop.permute.xlu1 %490 }
 0x1c2   :  { %201 = vrot.lane.b32.xlu0 %v180_v28, %s677_s0  ;;  %v493_v32 = vsel %vm168_vm1, %v491_v29, %v860_v3 }
 0x1c3   :  { %502 = vrot.lane.b32.xlu1 %v492_v30, %s677_s0 }
 0x1c5   :  { %v943_v31 = vpop.permute.xlu0 %214  ;;  %v955_v35 = vpop.permute.xlu1 %199 }
 0x1c6   :  { %508 = vrot.lane.b32.xlu0 %v493_v32, %s677_s0 }
 0x1c7   :  { %522 = vrot.lane.b32.xlu1 %v492_v30, %s678_s29 }
 0x1c9   :  { %v949_v33 = vpop.permute.xlu0 %500  ;;  %v962_v38 = vpop.permute.xlu1 %506 }
 0x1cb   :  { %203 = vrot.lane.b32.xlu1 %v178_v26, %s677_s0 }
 0x1cd   :  { %v952_v34 = vpop.permute.xlu0 %520  ;;  %v256_v41 = vpop.permute.xlu1 %255 }
 0x1ce   :  { %v258_v43 = vsel %vm168_vm1, %v256_v41, %v870_v5 }
 0x1cf   :  { %510 = vrot.lane.b32.xlu1 %v491_v29, %s677_s0 }
 0x1d1   :  { %v957_v36 = vpop.permute.xlu0 %218  ;;  %v555_v44 = vpop.permute.xlu1 %554 }
 0x1d2   :  { %v557_v47 = vsel %vm168_vm1, %v555_v44, %v876_v7  ;;  %v12_v7 = vand.u32 127, %v11_v4 }
 0x1d3   :  { %220 = vrot.lane.b32.xlu1 %v180_v28, %s678_s29 }
 0x1d4   :  { %v14_v13 = vcvt.s32.f32 %v12_v7 }
 0x1d5   :  { %v960_v37 = vpop.permute.xlu0 %524  ;;  %v991_v50 = vpop.permute.xlu1 %277 }
 0x1d6   :  { %v16_v17 = vadd.f32 0.5, %v14_v13 }
 0x1d7   :  { %526 = vrot.lane.b32.xlu1 %v493_v32, %s678_s29 }
 0x1d9   :  { %v254_v39 = vpop.permute.xlu0 %253  ;;  %v994_v52 = vpop.permute.xlu1 %570 }
 0x1da   :  { %275 = vrot.lane.b32.xlu0 %v254_v39, %s679_s30  ;;  %v257_v40 = vsel %vm168_vm1, %v254_v39, %v884_v9  ;;  %v13_v9 = vadd.s32 128, %v12_v7 }
 0x1db   :  { %273 = vrot.lane.b32.xlu1 %v257_v40, %s679_s30 }
 0x1dd   :  { %v553_v42 = vpop.permute.xlu0 %552  ;;  %v324_v55 = vpop.permute.xlu1 %323 }
 0x1de   :  { %568 = vrot.lane.b32.xlu0 %v553_v42, %s679_s30  ;;  %v556_v45 = vsel %vm168_vm1, %v553_v42, %v892_v12  ;;  %v326_v57 = vsel %vm168_vm1, %v324_v55, %v888_v10  ;;  %v15_v12 = vcvt.s32.f32 %v13_v9 }
 0x1df   :  { %294 = vrot.lane.b32.xlu1 %v257_v40, %s680_s3 }
 0x1e1   :  { %v976_v46 = vpop.permute.xlu0 %271  ;;  %v615_v58 = vpop.permute.xlu1 %614 }
 0x1e2   :  { %279 = vrot.lane.b32.xlu0 %v258_v43, %s679_s30  ;;  %v617_v59 = vsel %vm168_vm1, %v615_v58, %v900_v16  ;;  %v17_v16 = vadd.f32 0.5, %v15_v12 }
 0x1e3   :  { %566 = vrot.lane.b32.xlu1 %v556_v45, %s679_s30 }
 0x1e4   :  { %v19_v20 = vmul.f32 0.071428575, %v17_v16 }
 0x1e5   :  { %v983_v48 = vpop.permute.xlu0 %292 }
 0x1e6   :  { %572 = vrot.lane.b32.xlu0 %v557_v47, %s679_s30  ;;  %v666_v23 = vtrunc.f32 %v19_v20 }
 0x1e7   :  { %586 = vrot.lane.b32.xlu1 %v556_v45, %s680_s3 }
 0x1e8   :  { %v667_v28 = vcvt.f32.s32 %v666_v23 }
 0x1e9   :  { %v988_v49 = vpop.permute.xlu0 %296 }
 0x1ea   :  { %626 = vrot.lane.b32.xlu0 %v906_v18, %s681_s4  ;;  %v23_v32 = vmul.u32 14, %v667_v28 }
 0x1eb   :  { %281 = vrot.lane.b32.xlu1 %v256_v41, %s679_s30 }
 0x1ec   :  { %v1031_v42 = vsub.s32 %v13_v9, %v23_v32 }
 0x1ed   :  { %v322_v51 = vpop.permute.xlu0 %321 }
 0x1ee   :  { %v325_v53 = vsel %vm168_vm1, %v322_v51, %v912_v19  ;;  %vm182_vm4 = vcmp.lt.s32.totalorder %v1031_v42, 2  ;;  %vm234_vm5 = vcmp.ge.s32.totalorder %v1031_v42, 1  ;;  %vm260_vm11 = vcmp.lt.s32.totalorder %v1031_v42, 1 }
 0x1ef   :  { %574 = vrot.lane.b32.xlu1 %v555_v44, %s679_s30  ;;  %vm328_vm13 = vcmp.le.s32.totalorder %v1031_v42, 12 }
 0x1f1   :  { %v613_v54 = vpop.permute.xlu0 %612 }
 0x1f2   :  { %v616_v56 = vsel %vm168_vm1, %v613_v54, %v917_v21  ;;  %v18_v21 = vmul.f32 0.071428575, %v16_v17 }
 0x1f3   :  { %298 = vrot.lane.b32.xlu1 %v258_v43, %s680_s3 }
 0x1f4   :  { %v664_v24 = vtrunc.f32 %v18_v21 }
 0x1f5   :  { %v1009_v60 = vpop.permute.xlu0 %564 }
 0x1f6   :  { %v665_v29 = vcvt.f32.s32 %v664_v24 }
 0x1f7   :  { %590 = vrot.lane.b32.xlu1 %v557_v47, %s680_s3 }
 0x1f8   :  { %v22_v40 = vmul.u32 14, %v665_v29 }
 0x1f9   :  { %v1011_v62 = vpop.permute.xlu0 %584 }
 0x1fa   :  { %v1033_v44 = vsub.s32 %v12_v7, %v22_v40 }
 0x1fb   :  { %339 = vrot.lane.b32.xlu1 %v325_v53, %s681_s4 }
 0x1fc   :  { %vm181_vm7 = vcmp.lt.s32.totalorder %v1033_v44, 2  ;;  %vm233_vm8 = vcmp.ge.s32.totalorder %v1033_v44, 1  ;;  %vm259_vm10 = vcmp.lt.s32.totalorder %v1033_v44, 1  ;;  %vm327_vm12 = vcmp.le.s32.totalorder %v1033_v44, 12 }
 0x1fd   :  { %v1013_v0 = vpop.permute.xlu0 %588 }
 0x1ff   :  { %624 = vrot.lane.b32.xlu1 %v616_v56, %s681_s4 }
 0x201   :  { %v1015_v3 = vpop.permute.xlu0 %337 }
 0x203   :  { %343 = vrot.lane.b32.xlu1 %v326_v57, %s681_s4 }
 0x205   :  { %v1019_v6 = vpop.permute.xlu0 %622 }
 0x207   :  { %628 = vrot.lane.b32.xlu1 %v617_v59, %s681_s4 }
 0x209   :  { %v1025_v11 = vpop.permute.xlu0 %341 }
 0x22c   :  { %v198_v15 = vpop.permute.xlu0 %197 }
 0x22d   :  { %v196_v61 = vpop.permute.xlu1 %195 }
 0x22e   :  { %v206_v55 = vsel %vm205_vm3, %v935_v27, %v196_v61  ;;  %v207_v56 = vsel %vm205_vm3, %v196_v61, %v198_v15 }
 0x230   :  { %v505_v19 = vpop.permute.xlu0 %504 }
 0x231   :  { %v217_v63 = vpop.permute.xlu1 %216 }
 0x232   :  { %v223_v47 = vsel %vm222_vm2, %v943_v31, %v217_v63  ;;  %v230_v57 = vsel %vm182_vm4, %v207_v56, %v217_v63 }
 0x234   :  { %v202_v26 = vpop.permute.xlu0 %201 }
 0x235   :  { %v503_v1 = vpop.permute.xlu1 %502 }
 0x236   :  { %v512_v58 = vsel %vm205_vm3, %v949_v33, %v503_v1  ;;  %v513_v59 = vsel %vm205_vm3, %v503_v1, %v505_v19 }
 0x238   :  { %v509_v39 = vpop.permute.xlu0 %508 }
 0x239   :  { %v523_v2 = vpop.permute.xlu1 %522  ;;  %v514_v9 = vsel %vm205_vm3, %v962_v38, %v509_v39 }
 0x23a   :  { %v528_v53 = vsel %vm222_vm2, %v952_v34, %v523_v2  ;;  %v229_v34 = vsel %vm181_vm7, %v206_v55, %v223_v47  ;;  %v535_v61 = vsel %vm182_vm4, %v513_v59, %v523_v2  ;;  %v240_v2 = vsel %vm234_vm5, %v230_v57, 0.0 }
 0x23b   :  { %v534_v27 = vsel %vm181_vm7, %v512_v58, %v528_v53  ;;  %v239_v1 = vsel %vm233_vm8, %v229_v34, 0.0  ;;  %v539_v13 = vsel %vm234_vm5, %v535_v61, 0.0 }
 0x23c   :  { %v538_v12 = vsel %vm233_vm8, %v534_v27, 0.0 }
 0x23d   :  { %v1017_v5 = vpop.permute.xlu1 %203 }
 0x23e   :  { %v209_v15 = vsel %vm205_vm3, %v202_v26, %v1017_v5 }
 0x241   :  { %v1021_v8 = vpop.permute.xlu1 %510 }
 0x245   :  { %v1023_v10 = vpop.permute.xlu1 %220 }
 0x249   :  { %v1027_v14 = vpop.permute.xlu1 %526 }
 0x24c   :  { %v276_v43 = vpop.permute.xlu0 %275 }
 0x24d   :  { %v274_v18 = vpop.permute.xlu1 %273 }
 0x24e   :  { %v285_v4 = vsel %vm283_vm9, %v274_v18, %v276_v43 }
 0x250   :  { %v569_v54 = vpop.permute.xlu0 %568 }
 0x251   :  { %v295_v22 = vpop.permute.xlu1 %294 }
 0x252   :  { %v301_v31 = vsel %vm300_vm6, %v983_v48, %v295_v22  ;;  %v284_v48 = vsel %vm283_vm9, %v976_v46, %v274_v18  ;;  %v308_v33 = vsel %vm260_vm11, %v285_v4, %v295_v22  ;;  %v208_v46 = vsel %vm205_vm3, %v955_v35, %v202_v26 }
 0x253   :  { %v307_v63 = vsel %vm259_vm10, %v284_v48, %v301_v31  ;;  %v224_v35 = vsel %vm222_vm2, %v957_v36, %v1023_v10  ;;  %v312_v19 = vadd.f32 %v308_v33, %v240_v2  ;;  %v515_v36 = vsel %vm205_vm3, %v509_v39, %v1021_v8 }
 0x254   :  { %v280_v16 = vpop.permute.xlu0 %279  ;;  %v311_v18 = vadd.f32 %v307_v63, %v239_v1  ;;  %v529_v8 = vsel %vm222_vm2, %v960_v37, %v1027_v14 }
 0x255   :  { %v567_v25 = vpop.permute.xlu1 %566  ;;  %v286_v29 = vsel %vm283_vm9, %v991_v50, %v280_v16  ;;  %v536_v56 = vsel %vm181_vm7, %v514_v9, %v529_v8 }
 0x256   :  { %v577_v38 = vsel %vm283_vm9, %v567_v25, %v569_v54  ;;  %v576_v21 = vsel %vm283_vm9, %v1009_v60, %v567_v25  ;;  %v231_v60 = vsel %vm181_vm7, %v208_v46, %v224_v35 }
 0x257   :  { %v241_v53 = vsel %vm233_vm8, %v231_v60, 0.0 }
 0x258   :  { %v573_v39 = vpop.permute.xlu0 %572 }
 0x259   :  { %v587_v30 = vpop.permute.xlu1 %586  ;;  %v578_v31 = vsel %vm283_vm9, %v994_v52, %v573_v39 }
 0x25a   :  { %v592_v17 = vsel %vm300_vm6, %v1011_v62, %v587_v30  ;;  %v599_v22 = vsel %vm260_vm11, %v577_v38, %v587_v30 }
 0x25b   :  { %v598_v23 = vsel %vm259_vm10, %v576_v21, %v592_v17  ;;  %v603_v30 = vadd.f32 %v599_v22, %v539_v13 }
 0x25c   :  { %v627_v63 = vpop.permute.xlu0 %626 }
 0x25d   :  { %v1029_v41 = vpop.permute.xlu1 %281 }
 0x25e   :  { %v287_v32 = vsel %vm283_vm9, %v280_v16, %v1029_v41 }
 0x261   :  { %v1035_v45 = vpop.permute.xlu1 %574 }
 0x262   :  { %v579_v34 = vsel %vm283_vm9, %v573_v39, %v1035_v45 }
 0x265   :  { %v299_v51 = vpop.permute.xlu1 %298 }
 0x266   :  { %v302_v25 = vsel %vm300_vm6, %v988_v49, %v299_v51  ;;  %v602_v49 = vadd.f32 %v598_v23, %v538_v12  ;;  %v310_v40 = vsel %vm260_vm11, %v287_v32, %v299_v51 }
 0x267   :  { %v309_v43 = vsel %vm259_vm10, %v286_v29, %v302_v25 }
 0x268   :  { %v313_v58 = vadd.f32 %v309_v43, %v241_v53 }
 0x269   :  { %v591_v7 = vpop.permute.xlu1 %590 }
 0x26a   :  { %v593_v54 = vsel %vm300_vm6, %v1013_v0, %v591_v7  ;;  %v601_v0 = vsel %vm260_vm11, %v579_v34, %v591_v7  ;;  %v540_v7 = vsel %vm233_vm8, %v536_v56, 0.0 }
 0x26b   :  { %v600_v59 = vsel %vm259_vm10, %v578_v31, %v593_v54 }
 0x26c   :  { %v604_v1 = vadd.f32 %v600_v59, %v540_v7 }
 0x26d   :  { %v340_v20 = vpop.permute.xlu1 %339 }
 0x26e   :  { %v346_v5 = vsel %vm345_vm14, %v1015_v3, %v340_v20  ;;  %v353_v62 = vsel %vm328_vm13, %v340_v20, 0.0  ;;  %v232_v3 = vsel %vm182_vm4, %v209_v15, %v1023_v10 }
 0x26f   :  { %v352_v24 = vsel %vm327_vm12, %v346_v5, 0.0  ;;  %v357_v26 = vadd.f32 %v353_v62, %v312_v19  ;;  %v242_v41 = vsel %vm234_vm5, %v232_v3, 0.0 }
 0x270   :  { %v356_v28 = vadd.f32 %v352_v24, %v311_v18  ;;  %v314_v57 = vadd.f32 %v310_v40, %v242_v41 }
 0x271   :  { %362 = vst.msk [vmem:[%s1194_s2 + $0x8] sm:$0xff] %vm361_vm15, %v357_v26  ;;  %v625_v10 = vpop.permute.xlu1 %624 }
 0x272   :  { %360 = vst [vmem:[%s1194_s2] sm:$0xff] %v356_v28  ;;  %v630_v37 = vsel %vm345_vm14, %v1019_v6, %v625_v10  ;;  %v637_v50 = vsel %vm328_vm13, %v625_v10, 0.0  ;;  %v537_v6 = vsel %vm182_vm4, %v515_v36, %v1027_v14 }
 0x273   :  { %v636_v47 = vsel %vm327_vm12, %v630_v37, 0.0  ;;  %v641_v51 = vadd.f32 %v637_v50, %v603_v30  ;;  %v541_v48 = vsel %vm234_vm5, %v537_v6, 0.0 }
 0x274   :  { %v640_v55 = vadd.f32 %v636_v47, %v602_v49  ;;  %v605_v33 = vadd.f32 %v601_v0, %v541_v48 }
 0x275   :  { %645 = vst.msk [vmem:[%s1194_s2 + $0x28] sm:$0xff] %vm361_vm15, %v641_v51  ;;  %v344_v14 = vpop.permute.xlu1 %343 }
 0x276   :  { %644 = vst [vmem:[%s1194_s2 + $0x20] sm:$0xff] %v640_v55  ;;  %v347_v52 = vsel %vm345_vm14, %v1025_v11, %v344_v14  ;;  %v355_v45 = vsel %vm328_vm13, %v344_v14, 0.0 }
 0x277   :  { %v354_v27 = vsel %vm327_vm12, %v347_v52, 0.0  ;;  %v359_v61 = vadd.f32 %v355_v45, %v314_v57 }
 0x278   :  { %v358_v4 = vadd.f32 %v354_v27, %v313_v58 }
 0x279   :  { %364 = vst.msk [vmem:[%s1194_s2 + $0x18] sm:$0xff] %vm361_vm15, %v359_v61  ;;  %v629_v11 = vpop.permute.xlu1 %628 }
 0x27a   :  { %363 = vst [vmem:[%s1194_s2 + $0x10] sm:$0xff] %v358_v4  ;;  %v631_v2 = vsel %vm345_vm14, %v627_v63, %v629_v11  ;;  %v639_v46 = vsel %vm328_vm13, %v629_v11, 0.0 }
 0x27b   :  { %v638_v9 = vsel %vm327_vm12, %v631_v2, 0.0  ;;  %v643_v12 = vadd.f32 %v639_v46, %v605_v33 }
 0x27c   :  { %v642_v13 = vadd.f32 %v638_v9, %v604_v1 }
 0x27d   :  { %647 = vst.msk [vmem:[%s1194_s2 + $0x38] sm:$0xff] %vm361_vm15, %v643_v12 }
 0x27e   :  { %646 = vst [vmem:[%s1194_s2 + $0x30] sm:$0xff] %v642_v13 }

</bundles_post_ra>
